<compile_context>
chip_gen: v7x
topology: tpu7x:2x2x1
jax: 0.10.0
libtpu: 0.0.40
codegen_flags: <defaults>
</compile_context>

<pallas_src>
import functools

import jax
import jax.numpy as jnp
from jax.experimental import pallas as pl
from jax.experimental.pallas import tpu as pltpu

_LANES = 128
_MAX_BLOCK_ROWS = 4096  # 4096 * 128 * 4 B = 2 MiB per input block (f32)


def _focal_elements(x, t, alpha, gamma):
    """Elementwise focal loss in f32. `alpha`/`gamma` are Python floats."""
    x = x.astype(jnp.float32)
    t = t.astype(jnp.float32)

    # Single EUP exp, reused for both the stable softplus and the sigmoid.
    e = jnp.exp(-jnp.abs(x))                      # exp(-|x|)
    inv = 1.0 / (1.0 + e)                         # 1 / (1 + exp(-|x|))
    probs = jnp.where(x >= 0.0, inv, e * inv)     # sigmoid(x)

    # Numerically stable BCE-with-logits: max(x,0) - x*t + log(1 + exp(-|x|))
    ce = jnp.maximum(x, 0.0) - x * t + jnp.log1p(e)

    p_t = probs * t + (1.0 - probs) * (1.0 - t)
    one_m_pt = 1.0 - p_t
    g = float(gamma)
    if g == 2.0:
        mod = one_m_pt * one_m_pt                 # VPU square, no EUP log/exp
    elif g.is_integer() and g >= 0.0:
        mod = jnp.ones_like(one_m_pt)
        for _ in range(int(g)):
            mod = mod * one_m_pt
    else:
        mod = jnp.power(one_m_pt, g)

    alpha_t = alpha * t + (1.0 - alpha) * (1.0 - t)
    return alpha_t * mod * ce


def _focal_partial_kernel(logits_ref, targets_ref, partial_ref, *, alpha, gamma):
    focal = _focal_elements(logits_ref[...], targets_ref[...], alpha, gamma)
    # Lane-dense (1, 128) partial per grid step; final tiny reduce in wrapper.
    partial_ref[...] = jnp.sum(focal, axis=0, keepdims=True)


def _focal_elementwise_kernel(logits_ref, targets_ref, out_ref, *, alpha, gamma):
    out_ref[...] = _focal_elements(logits_ref[...], targets_ref[...], alpha, gamma)


def _flatten_pad(logits, targets):
    """Flatten (N, C) to lane-dense (rows_pad, 128) with zero-loss padding."""
    N, C = logits.shape
    total = N * C
    rows = pl.cdiv(total, _LANES)
    block_rows = max(8, min(_MAX_BLOCK_ROWS, 1 << (rows - 1).bit_length()))
    num_blocks = pl.cdiv(rows, block_rows)
    rows_pad = num_blocks * block_rows
    pad = rows_pad * _LANES - total
    # Padding (logit=-100, target=0): sigmoid->0, softplus->0, (1-p_t)^g->0,
    # so padded elements contribute exactly 0 to the sum.
    x = jnp.pad(logits.reshape(-1).astype(jnp.float32), (0, pad),
                constant_values=-100.0).reshape(rows_pad, _LANES)
    t = jnp.pad(targets.reshape(-1).astype(jnp.float32), (0, pad),
                constant_values=0.0).reshape(rows_pad, _LANES)
    return x, t, total, rows_pad, num_blocks, block_rows


def multilabel_focal_loss(logits, targets, *, alpha=0.25, gamma=2.0,
                          reduction="mean"):
    """Pallas TPU implementation of MultiLabelFocalLoss forward."""
    N, C = logits.shape
    x, t, total, rows_pad, num_blocks, block_rows = _flatten_pad(logits, targets)

    kernel_kwargs = dict(alpha=float(alpha), gamma=float(gamma))
    cparams = pltpu.CompilerParams(
        dimension_semantics=("parallel",),      # independent blocks -> megacore
        vmem_limit_bytes=32 * 1024 * 1024,      # explicit, safe on v5e/v6e/v7x
    )
    in_specs = [pl.BlockSpec((block_rows, _LANES), lambda i: (i, 0)),
                pl.BlockSpec((block_rows, _LANES), lambda i: (i, 0))]

    if reduction in ("mean", "sum"):
        partials = pl.pallas_call(
            functools.partial(_focal_partial_kernel, **kernel_kwargs),
            out_shape=jax.ShapeDtypeStruct((num_blocks, _LANES), jnp.float32),
            grid_spec=pltpu.PrefetchScalarGridSpec(
                num_scalar_prefetch=0,
                grid=(num_blocks,),
                in_specs=in_specs,
                out_specs=pl.BlockSpec((1, _LANES), lambda i: (i, 0)),
            ),
            compiler_params=cparams,
        )(x, t)
        total_sum = jnp.sum(partials)
        if reduction == "mean":
            return total_sum / jnp.float32(total)
        return total_sum
    elif reduction == "none":
        out = pl.pallas_call(
            functools.partial(_focal_elementwise_kernel, **kernel_kwargs),
            out_shape=jax.ShapeDtypeStruct((rows_pad, _LANES), jnp.float32),
            grid_spec=pltpu.PrefetchScalarGridSpec(
                num_scalar_prefetch=0,
                grid=(num_blocks,),
                in_specs=in_specs,
                out_specs=pl.BlockSpec((block_rows, _LANES), lambda i: (i, 0)),
            ),
            compiler_params=cparams,
        )(x, t)
        return out.reshape(-1)[:total].reshape(N, C)
    else:
        raise ValueError(f"unknown reduction: {reduction}")


def _reference(logits, targets, alpha=0.25, gamma=2.0, reduction="mean"):
    x = logits.astype(jnp.float32)
    t = targets.astype(jnp.float32)
    probs = jax.nn.sigmoid(x)
    ce = jnp.maximum(x, 0.0) - x * t + jnp.log1p(jnp.exp(-jnp.abs(x)))
    p_t = probs * t + (1 - probs) * (1 - t)
    alpha_t = alpha * t + (1 - alpha) * (1 - t)
    focal = alpha_t * (1 - p_t) ** gamma * ce
    if reduction == "mean":
        return jnp.mean(focal)
    if reduction == "sum":
        return jnp.sum(focal)
    return focal


if __name__ == "__main__":
    key = jax.random.PRNGKey(0)
    k1, k2, k3, k4 = jax.random.split(key, 4)

    # Case 1: lane-aligned (N, C).
    N1, C1 = 16, 128
    logits1 = jax.random.normal(k1, (N1, C1), dtype=jnp.float32) * 2.0
    targets1 = (jax.random.uniform(k2, (N1, C1)) > 0.7).astype(jnp.float32)
    loss1 = jax.block_until_ready(
        multilabel_focal_loss(logits1, targets1, alpha=0.25, gamma=2.0))
    ref1 = _reference(logits1, targets1)
    assert jnp.allclose(loss1, ref1, rtol=1e-5, atol=1e-6), (loss1, ref1)

    # Case 2: C not a multiple of 128 (exercises the padded flatten path).
    N2, C2 = 12, 37
    logits2 = jax.random.normal(k3, (N2, C2), dtype=jnp.float32) * 2.0
    targets2 = (jax.random.uniform(k4, (N2, C2)) > 0.7).astype(jnp.float32)
    loss2 = jax.block_until_ready(
        multilabel_focal_loss(logits2, targets2, alpha=0.25, gamma=2.0))
    ref2 = _reference(logits2, targets2)
    assert jnp.allclose(loss2, ref2, rtol=1e-5, atol=1e-6), (loss2, ref2)

    # reduction='none' path.
    none_out = jax.block_until_ready(
        multilabel_focal_loss(logits2, targets2, reduction="none"))
    ref_none = _reference(logits2, targets2, reduction="none")
    assert jnp.allclose(none_out, ref_none, rtol=1e-5, atol=1e-6)

    print("KERNEL_OK")
</pallas_src>

<mosaic_0001>
module attributes {stable_mosaic.version = 11 : i64} {
  func.func @_focal_partial_kernel(%arg0: i32, %arg1: memref<16x128xf32, #tpu.memory_space<vmem>>, %arg2: memref<16x128xf32, #tpu.memory_space<vmem>>, %arg3: memref<1x128xf32, #tpu.memory_space<vmem>>) attributes {dimension_semantics = [#tpu.dimension_semantics<parallel>], iteration_bounds = array<i64: 1>, scalar_prefetch = 0 : i64, scratch_operands = 0 : i64, tpu.core_type = #tpu.core_type<tc>, window_params = [{transform_indices = @transform_0, window_bounds = array<i64: 16, 128>}, {transform_indices = @transform_1, window_bounds = array<i64: 16, 128>}, {transform_indices = @transform_2, window_bounds = array<i64: 1, 128>}]} {
    %c0 = arith.constant 0 : index
    %c0_0 = arith.constant 0 : index
    %0 = vector.load %arg1[%c0, %c0_0] : memref<16x128xf32, #tpu.memory_space<vmem>>, vector<16x128xf32>
    %c0_1 = arith.constant 0 : index
    %c0_2 = arith.constant 0 : index
    %1 = vector.load %arg2[%c0_1, %c0_2] : memref<16x128xf32, #tpu.memory_space<vmem>>, vector<16x128xf32>
    %2 = math.absf %0 : vector<16x128xf32>
    %cst = arith.constant 0.000000e+00 : f32
    %3 = vector.broadcast %cst : f32 to vector<16x128xf32>
    %4 = arith.subf %3, %2 : vector<16x128xf32>
    %5 = math.exp %4 : vector<16x128xf32>
    %cst_3 = arith.constant 1.000000e+00 : f32
    %6 = vector.broadcast %cst_3 : f32 to vector<16x128xf32>
    %7 = arith.addf %6, %5 : vector<16x128xf32>
    %cst_4 = arith.constant 1.000000e+00 : f32
    %8 = vector.broadcast %cst_4 : f32 to vector<16x128xf32>
    %9 = arith.divf %8, %7 : vector<16x128xf32>
    %cst_5 = arith.constant 0.000000e+00 : f32
    %10 = vector.broadcast %cst_5 : f32 to vector<16x128xf32>
    %11 = arith.cmpf oge, %0, %10 : vector<16x128xf32>
    %12 = arith.mulf %5, %9 : vector<16x128xf32>
    %13 = arith.select %11, %9, %12 : vector<16x128xi1>, vector<16x128xf32>
    %cst_6 = arith.constant 0.000000e+00 : f32
    %14 = vector.broadcast %cst_6 : f32 to vector<16x128xf32>
    %15 = arith.maximumf %0, %14 : vector<16x128xf32>
    %16 = arith.mulf %0, %1 : vector<16x128xf32>
    %17 = arith.subf %15, %16 : vector<16x128xf32>
    %18 = math.log1p %5 : vector<16x128xf32>
    %19 = arith.addf %17, %18 : vector<16x128xf32>
    %20 = arith.mulf %13, %1 : vector<16x128xf32>
    %cst_7 = arith.constant 1.000000e+00 : f32
    %21 = vector.broadcast %cst_7 : f32 to vector<16x128xf32>
    %22 = arith.subf %21, %13 : vector<16x128xf32>
    %cst_8 = arith.constant 1.000000e+00 : f32
    %23 = vector.broadcast %cst_8 : f32 to vector<16x128xf32>
    %24 = arith.subf %23, %1 : vector<16x128xf32>
    %25 = arith.mulf %22, %24 : vector<16x128xf32>
    %26 = arith.addf %20, %25 : vector<16x128xf32>
    %cst_9 = arith.constant 1.000000e+00 : f32
    %27 = vector.broadcast %cst_9 : f32 to vector<16x128xf32>
    %28 = arith.subf %27, %26 : vector<16x128xf32>
    %29 = arith.mulf %28, %28 : vector<16x128xf32>
    %cst_10 = arith.constant 2.500000e-01 : f32
    %30 = vector.broadcast %cst_10 : f32 to vector<16x128xf32>
    %31 = arith.mulf %30, %1 : vector<16x128xf32>
    %cst_11 = arith.constant 1.000000e+00 : f32
    %32 = vector.broadcast %cst_11 : f32 to vector<16x128xf32>
    %33 = arith.subf %32, %1 : vector<16x128xf32>
    %cst_12 = arith.constant 7.500000e-01 : f32
    %34 = vector.broadcast %cst_12 : f32 to vector<16x128xf32>
    %35 = arith.mulf %34, %33 : vector<16x128xf32>
    %36 = arith.addf %31, %35 : vector<16x128xf32>
    %37 = arith.mulf %36, %29 : vector<16x128xf32>
    %38 = arith.mulf %37, %19 : vector<16x128xf32>
    %cst_13 = arith.constant dense<0.000000e+00> : vector<128xf32>
    %39 = vector.multi_reduction <add>, %38, %cst_13 [0] : vector<16x128xf32> to vector<128xf32>
    %40 = vector.shape_cast %39 : vector<128xf32> to vector<1x128xf32>
    %c0_14 = arith.constant 0 : index
    %c0_15 = arith.constant 0 : index
    %41 = vector.load %arg3[%c0_14, %c0_15] : memref<1x128xf32, #tpu.memory_space<vmem>>, vector<1x128xf32>
    tpu.vector_store %arg3[%c0_14, %c0_15], %40 {strides = array<i32>} : memref<1x128xf32, #tpu.memory_space<vmem>>, vector<1x128xf32>,
    return
  }
  func.func @transform_0(%arg0: i32) -> (i32, i32) {
    %c0_i32 = arith.constant 0 : i32
    %c0_i32_0 = arith.constant 0 : i32
    return %arg0, %c0_i32 : i32, i32
  }
  func.func @transform_1(%arg0: i32) -> (i32, i32) {
    %c0_i32 = arith.constant 0 : i32
    %c0_i32_0 = arith.constant 0 : i32
    return %arg0, %c0_i32 : i32, i32
  }
  func.func @transform_2(%arg0: i32) -> (i32, i32) {
    %c0_i32 = arith.constant 0 : i32
    %c0_i32_0 = arith.constant 0 : i32
    return %arg0, %c0_i32 : i32, i32
  }
}

</mosaic_0001>

<bundles_post_ra>
// kernel: tpu_custom_call.1
= control target key start
LH: loop header
LB: loop body
LE: loop exit
PB: predicated region body
PF: predicated region fallthrough
CT: control target
= control target key end

     0   :  { %7 = vsyncpa [#allocation3], 0  ;;  %s296_s0 = inlined_call_operand.hbm [shape: f32[16,128], index: 0, kind: input, shape index: {}]   ;;  %s297_s1 = inlined_call_operand.hbm [shape: f32[16,128], index: 1, kind: input, shape index: {}]   ;;  %s298_s2 = inlined_call_operand.hbm [shape: f32[1,128], index: 2, kind: output, shape index: {}]  }
   0x1   :  { %8 = vsyncpa [#allocation6], 0 }
   0x2   :  { %9 = vsyncpa [#allocation4], 0  ;;  %s227_s9 = smov [#allocation2]   ;;  %s155_s13 = scalar_lea.hbm %s296_s0, 256 }
   0x3   :  { %s15_s10 = sshll.u32 %s227_s9, 4  ;;  %p156_p0 = scmp.ne.s32.totalorder %s296_s0, %s155_s13  ;;  %s16_s10 = int_to_ptr.vmem [resolvable:$true] %s15_s10 }
   0x4   :  { %p159_p1 = scmp.lt.u32.totalorder %s155_s13, %s296_s0 }
   0x6   :  { %p161_p2 = pnand %p159_p1, %p156_p0 }
   0x8   :  { %164 = shalt.err (!%p161_p2)
}
   0x9   :  { %s165_s18 = scalar_lea.vmem %s16_s10, 256  ;;  %p170_p4 = scmp.lt.s32.totalorder %s16_s10, %s16_s10 }
   0xa   :  { %p166_p3 = scmp.ne.s32.totalorder %s16_s10, %s165_s18  ;;  %p171_p5 = scmp.lt.s32.totalorder %s165_s18, %s165_s18 }
   0xc   :  { %p172_p6 = por %p171_p5, %p170_p4 }
   0xe   :  { %p173_p7 = pnand %p172_p6, %p166_p3 }
  0x10   :  { %176 = shalt.err (!%p173_p7)
}
  0x11   :  { %s228_s19 = smov 128   ;;  %s229_s20 = smov 8  }
  0x12   :  { %21 = dma.hbm_to_vmem [thread:$0]  %s296_s0, 256, %s16_s10, [#allocation3], %s228_s19, %s228_s19, %s229_s20  }
  0x13   :  { %s230_s23 = smov [#allocation5]   ;;  %s177_s27 = scalar_lea.hbm %s297_s1, 256 }
  0x14   :  { %s27_s24 = sshll.u32 %s230_s23, 4  ;;  %p178_p8 = scmp.ne.s32.totalorder %s297_s1, %s177_s27  ;;  %s28_s24 = int_to_ptr.vmem [resolvable:$true] %s27_s24 }
  0x15   :  { %p181_p9 = scmp.lt.u32.totalorder %s177_s27, %s297_s1 }
  0x17   :  { %p183_p10 = pnand %p181_p9, %p178_p8 }
  0x19   :  { %186 = shalt.err (!%p183_p10)
}
  0x1a   :  { %s187_s4 = scalar_lea.vmem %s28_s24, 256  ;;  %p192_p12 = scmp.lt.s32.totalorder %s28_s24, %s28_s24 }
  0x1b   :  { %p188_p11 = scmp.ne.s32.totalorder %s28_s24, %s187_s4  ;;  %p193_p13 = scmp.lt.s32.totalorder %s187_s4, %s187_s4 }
  0x1d   :  { %p194_p0 = por %p193_p13, %p192_p12 }
  0x1f   :  { %p195_p1 = pnand %p194_p0, %p188_p11 }
  0x21   :  { %198 = shalt.err (!%p195_p1)
}
  0x22   :  { %33 = dma.hbm_to_vmem [thread:$0]  %s297_s1, 256, %s28_s24, [#allocation6], %s228_s19, %s228_s19, %s229_s20  }
  0x23   :  { %221 = dma.done.wait [#allocation3], 256  }
  0x24   :  { %222 = vsyncadd [#allocation3], 4294967040 }
  0x25   :  { %223 = dma.done.wait [#allocation6], 256  }
  0x26   :  { %224 = vsyncadd [#allocation6], 4294967040  ;;  %v40_v0 = vld [vmem:[#allocation2] sm:$0xff]  ;;  %v41_v1 = vld [vmem:[#allocation2 + $0x8] sm:$0xff]  ;;  %s231_s1 = smov [#allocation7]  }
  0x27   :  { %v44_v2 = vand.u32 2147483647, %v40_v0  ;;  %v45_v3 = vand.u32 2147483647, %v41_v1  ;;  %v42_v14 = vld [vmem:[#allocation5] sm:$0xff]  ;;  %v43_v16 = vld [vmem:[#allocation5 + $0x8] sm:$0xff] }
  0x28   :  { %vm58_vm0 = vcmp.ge.f32.partialorder %v40_v0, 0.0  ;;  %vm59_vm1 = vcmp.ge.f32.partialorder %v41_v1, 0.0  ;;  %v64_v17 = vmax.f32 %v40_v0, 0.0  ;;  %v66_v18 = vmul.f32 %v42_v14, %v40_v0  ;;  %s128_s6 = sshll.u32 %s231_s1, 4  ;;  %s129_s6 = int_to_ptr.vmem [resolvable:$true] %s128_s6 }
  0x29   :  { %v46_v4 = vsub.f32 0.0, %v44_v2  ;;  %v47_v5 = vsub.f32 0.0, %v45_v3  ;;  %v65_v21 = vmax.f32 %v41_v1, 0.0  ;;  %v67_v22 = vmul.f32 %v43_v16, %v41_v1  ;;  %s199_s7 = scalar_lea.vmem %s129_s6, 16  ;;  %s203_s8 = scalar_lea.vmem %s129_s6, 32 }
  0x2a   :  { %v94_v28 = vsub.f32 1.0, %v42_v14  ;;  %v95_v32 = vsub.f32 1.0, %v43_v16  ;;  %v104_v33 = vmul.f32 0.25, %v42_v14  ;;  %v105_v48 = vmul.f32 0.25, %v43_v16  ;;  %p200_p2 = scmp.ne.s32.totalorder %s129_s6, %s199_s7  ;;  %p204_p3 = scmp.lt.s32.totalorder %s129_s6, %s129_s6 }
  0x2b   :  { %v48_v6 = vmul.f32 1.442695, %v46_v4  ;;  %v50_v7 = vmul.f32 1.442695, %v47_v5  ;;  %v68_v50 = vsub.f32 %v64_v17, %v66_v18  ;;  %v69_v52 = vsub.f32 %v65_v21, %v67_v22  ;;  %p205_p4 = scmp.lt.s32.totalorder %s203_s8, %s199_s7 }
  0x2c   :  { %v106_v37 = vmul.f32 0.75, %v94_v28  ;;  %v107_v49 = vmul.f32 0.75, %v95_v32 }
  0x2d   :  { %143 = vpow2.f32 %v48_v6  ;;  %p206_p5 = por %p205_p4, %p204_p3 }
  0x2e   :  { %145 = vpow2.f32 %v50_v7  ;;  %v108_v57 = vadd.f32 %v106_v37, %v104_v33  ;;  %v109_v59 = vadd.f32 %v107_v49, %v105_v48 }
  0x2f   :  { %p207_p6 = pnand %p206_p5, %p200_p2 }
  0x37   :  { %v144_v8 = vpop.eup %143 }
  0x38   :  { %v146_v9 = vpop.eup %145  ;;  %v52_v10 = vadd.f32 1.0, %v144_v8  ;;  %v73_v12 = vmul.f32 -0.5, %v144_v8  ;;  %v76_v26 = vand.u32 2147483647, %v144_v8 }
  0x39   :  { %v53_v11 = vadd.f32 1.0, %v146_v9  ;;  %v82_v13 = vmul.f32 -0.5, %v146_v9  ;;  %v85_v31 = vand.u32 2147483647, %v146_v9 }
  0x3a   :  { %147 = vrcp.f32 %v52_v10  ;;  %v74_v23 = vadd.f32 1.0, %v73_v12  ;;  %vm272_vm2 = vcmp.lt.f32.partialorder %v76_v26, 0.0004427343 }
  0x3b   :  { %149 = vrcp.f32 %v53_v11  ;;  %v83_v27 = vadd.f32 1.0, %v82_v13  ;;  %vm276_vm3 = vcmp.lt.f32.partialorder %v85_v31, 0.0004427343 }
  0x3c   :  { %151 = vlog2.f32 %v52_v10  ;;  %v75_v39 = vmul.f32 %v144_v8, %v74_v23 }
  0x3d   :  { %153 = vlog2.f32 %v53_v11  ;;  %v84_v44 = vmul.f32 %v146_v9, %v83_v27 }
  0x44   :  { %v148_v15 = vpop.eup %147 }
  0x45   :  { %v150_v19 = vpop.eup %149  ;;  %v60_v20 = vmul.f32 %v148_v15, %v144_v8 }
  0x46   :  { %v152_v24 = vpop.eup %151  ;;  %v61_v25 = vmul.f32 %v150_v19, %v146_v9 }
  0x47   :  { %v154_v29 = vpop.eup %153  ;;  %v62_v30 = vsel %vm58_vm0, %v148_v15, %v60_v20  ;;  %v72_v38 = vmul.f32 0.6931472, %v152_v24 }
  0x48   :  { %v63_v34 = vsel %vm59_vm1, %v150_v19, %v61_v25  ;;  %v90_v35 = vmul.f32 %v62_v30, %v42_v14  ;;  %v92_v36 = vsub.f32 1.0, %v62_v30  ;;  %v81_v43 = vmul.f32 0.6931472, %v154_v29 }
  0x49   :  { %v91_v40 = vmul.f32 %v63_v34, %v43_v16  ;;  %v93_v41 = vsub.f32 1.0, %v63_v34  ;;  %v78_v53 = vsel %vm272_vm2, %v75_v39, %v72_v38 }
  0x4a   :  { %v96_v45 = vmul.f32 %v94_v28, %v92_v36  ;;  %v87_v55 = vsel %vm276_vm3, %v84_v44, %v81_v43  ;;  %v88_v60 = vadd.f32 %v78_v53, %v68_v50 }
  0x4b   :  { %v97_v47 = vmul.f32 %v95_v32, %v93_v41  ;;  %v89_v62 = vadd.f32 %v87_v55, %v69_v52 }
  0x4c   :  { %v98_v51 = vadd.f32 %v96_v45, %v90_v35 }
  0x4d   :  { %v99_v54 = vadd.f32 %v97_v47, %v91_v40 }
  0x4e   :  { %v100_v56 = vsub.f32 1.0, %v98_v51 }
  0x4f   :  { %v101_v58 = vsub.f32 1.0, %v99_v54 }
  0x50   :  { %v102_v61 = vmul.f32 %v100_v56, %v100_v56 }
  0x51   :  { %v103_v63 = vmul.f32 %v101_v58, %v101_v58 }
  0x52   :  { %v110_v0 = vmul.f32 %v108_v57, %v102_v61 }
  0x53   :  { %v111_v1 = vmul.f32 %v109_v59, %v103_v63 }
  0x54   :  { %v112_v2 = vmul.f32 %v110_v0, %v88_v60 }
  0x55   :  { %v113_v3 = vmul.f32 %v111_v1, %v89_v62 }
  0x57   :  { %v114_v4 = vadd.f32 %v113_v3, %v112_v2 }
  0x59   :  { %v115_v5 = vrot.slane %v114_v4, 4 }
  0x5b   :  { %v116_v6 = vadd.f32 %v115_v5, %v114_v4 }
  0x5d   :  { %v117_v7 = vrot.slane %v116_v6, 2 }
  0x5f   :  { %v118_v8 = vadd.f32 %v117_v7, %v116_v6 }
  0x61   :  { %v119_v9 = vrot.slane %v118_v8, 1 }
  0x63   :  { %v120_v10 = vadd.f32 %v119_v9, %v118_v8 }
  0x65   :  { %121 = vst [vmem:[#allocation7] sm:$0x1] %v120_v10 }
  0x66   :  { %210 = shalt.err (!%p207_p6)
}
  0x67   :  { %s211_s11 = scalar_lea.hbm %s298_s2, 16 }
  0x68   :  { %p212_p7 = scmp.ne.s32.totalorder %s298_s2, %s211_s11  ;;  %p215_p8 = scmp.lt.u32.totalorder %s211_s11, %s298_s2 }
  0x6a   :  { %p217_p9 = pnand %p215_p8, %p212_p7 }
  0x6c   :  { %220 = shalt.err (!%p217_p9)
}
  0x6d   :  { %131 = dma.vmem_to_hbm [thread:$0]  %s129_s6, 16, %s298_s2, [#allocation4]  }
  0x6e   :  { %225 = dma.done.wait [#allocation4], 16  }
  0x6f   :  { %226 = vsyncadd [#allocation4], 4294967280 }
  0x70   :  { %135 = vsyncpa [#allocation3], 1 }
  0x71   :  { %136 = vsyncpa [#allocation6], 1 }
  0x72   :  { %137 = vsyncpa [#allocation4], 1 }

</bundles_post_ra>
